<compile_context>
chip_gen: v7x
topology: tpu7x:2x2x1
jax: 0.10.0
libtpu: 0.0.40
codegen_flags: <defaults>
</compile_context>

<pallas_src>
import math

import numpy as np
import jax
import jax.numpy as jnp
from jax import lax
from jax.experimental import pallas as pl
from jax.experimental.pallas import tpu as pltpu


# ------------------------------- fused kernel --------------------------------

def _net_fused_kernel(a_ref, x_ref, w1_ref, b1_ref, w2_ref, b2_ref,
                      p_ref, same_ref, kvec_ref, member_ref,
                      wfc_ref, bfc_ref, o_ref):
    a = a_ref[...]                                               # (N, N) A_hat, loaded once, reused

    # --- GCNConv(F_in, 64) + relu ---
    xw1 = jnp.dot(x_ref[...], w1_ref[...], preferred_element_type=jnp.float32)
    h1 = jnp.maximum(jnp.dot(a, xw1, preferred_element_type=jnp.float32) + b1_ref[...], 0.0)

    # --- GCNConv(64, 128) + relu ---
    xw2 = jnp.dot(h1, w2_ref[...], preferred_element_type=jnp.float32)
    h2 = jnp.maximum(jnp.dot(a, xw2, preferred_element_type=jnp.float32) + b2_ref[...], 0.0)

    # --- TopKPooling score: s = tanh(x . p / ||p||), kept in registers/VMEM (never stored) ---
    p = p_ref[...]                                               # (1, 128)
    inv_norm = lax.rsqrt(jnp.sum(p * p, axis=1, keepdims=True))  # (1, 1)
    s_col = jnp.tanh(jnp.sum(h2 * p, axis=1, keepdims=True) * inv_norm)   # (N, 1)
    s_row = jnp.transpose(s_col)                                 # (1, N), same values -> consistent ties

    # --- per-graph top-k selection, vectorized as a pairwise rank ---
    n = a.shape[0]
    row_idx = lax.broadcasted_iota(jnp.int32, (n, n), 0)         # i
    col_idx = lax.broadcasted_iota(jnp.int32, (n, n), 1)         # j
    # beats[i, j]: node j outranks node i (strict score, index tie-break)
    beats = (s_row > s_col) | ((s_row == s_col) & (col_idx < row_idx))
    in_graph = same_ref[...] > 0.5                               # (N, N) same-graph mask
    rank = jnp.sum((beats & in_graph).astype(jnp.float32), axis=1, keepdims=True)   # (N, 1)
    selected = rank < kvec_ref[...]                              # (N, 1) bool: node survives TopK
    # TODO(synk): TopKPooling's pruned edge_index / batch / perm outputs are not materialized
    #             (they are unused by the final log-softmax output).

    # --- TopK scaling + global max pool over each graph (vectorized over graphs) ---
    xs = h2 * s_col                                              # (N, 128) scaled features
    pool_mask = (member_ref[...] > 0.5) & selected[None, :, :]   # (B, N, 1)
    masked = jnp.where(pool_mask, xs[None, :, :], -1e30)         # (B, N, 128), finite fill (no -inf/NaN)
    pooled = jnp.max(masked, axis=1)                             # (B, 128)

    # --- Linear(128, C) + log_softmax, one batched matmul ---
    logits = jnp.dot(pooled, wfc_ref[...], preferred_element_type=jnp.float32) + bfc_ref[...]
    mx = jnp.max(logits, axis=1, keepdims=True)
    lse = mx + jnp.log(jnp.sum(jnp.exp(logits - mx), axis=1, keepdims=True))
    o_ref[...] = logits - lse                                    # (B, C)


# ------------------------------ host wrapper ---------------------------------

def net_forward(x, a_hat, batch_np, node_counts, params, ratio=0.8):
    """Full Net.forward as a single fused pallas_call."""
    w1, b1, w2, b2, p_topk, w_fc, b_fc = params
    n, f_in = x.shape
    num_graphs = len(node_counts)
    num_classes = w_fc.shape[1]

    # Static (data-independent) batch constants, built once with numpy (no device dispatch chain).
    same_graph = (batch_np[:, None] == batch_np[None, :]).astype(np.float32)          # (N, N)
    kvec = np.array([math.ceil(ratio * node_counts[g]) for g in batch_np],
                    np.float32).reshape(n, 1)                                          # (N, 1)
    member = (np.arange(num_graphs)[:, None] == batch_np[None, :]
              ).astype(np.float32)[:, :, None]                                         # (B, N, 1)

    vmem = lambda: pl.BlockSpec(memory_space=pltpu.MemorySpace.VMEM)
    flops = 2 * (n * f_in * 64 + n * n * 64 + n * 64 * 128 + n * n * 128
                 + n * 128 + num_graphs * 128 * num_classes)
    bytes_accessed = 4 * int(a_hat.size + x.size + w1.size + b1.size + w2.size + b2.size
                             + p_topk.size + same_graph.size + kvec.size + member.size
                             + w_fc.size + b_fc.size + num_graphs * num_classes)

    return pl.pallas_call(
        _net_fused_kernel,
        out_shape=jax.ShapeDtypeStruct((num_graphs, num_classes), jnp.float32),
        in_specs=[vmem() for _ in range(12)],
        out_specs=pl.BlockSpec(memory_space=pltpu.MemorySpace.VMEM),
        cost_estimate=pl.CostEstimate(
            flops=flops,
            transcendentals=n + num_graphs * (num_classes + 1) + 1,
            bytes_accessed=bytes_accessed),
    )(a_hat, x, w1, b1, w2, b2, p_topk,
      jnp.asarray(same_graph), jnp.asarray(kvec), jnp.asarray(member), w_fc, b_fc)


# --------------------------------- main ---------------------------------------

def _glorot(key, shape):
    limit = math.sqrt(6.0 / (shape[0] + shape[1]))
    return jax.random.uniform(key, shape, jnp.float32, minval=-limit, maxval=limit)


if __name__ == "__main__":
    num_node_features = 8
    num_classes = 4
    node_counts = [10, 6]                 # two small graphs in one batch
    N = sum(node_counts)                  # 16 nodes total
    B = len(node_counts)

    # --- synthetic graph: a ring inside each graph, both directions (undirected) ---
    src, dst, batch_list = [], [], []
    offset = 0
    for g, n_g in enumerate(node_counts):
        for i in range(n_g):
            j = (i + 1) % n_g
            src += [offset + i, offset + j]
            dst += [offset + j, offset + i]
        batch_list += [g] * n_g
        offset += n_g
    batch_np = np.array(batch_list, dtype=np.int32)            # (16,)

    # --- dense GCN-normalized adjacency: A_hat = D^-1/2 (A + I) D^-1/2 (built on host, numpy) ---
    A = np.zeros((N, N), np.float32)
    for s_, d_ in zip(src, dst):
        A[d_, s_] += 1.0
    A += np.eye(N, dtype=np.float32)                            # self loops
    deg = A.sum(axis=1)
    d_inv_sqrt = deg ** -0.5
    a_hat = jnp.asarray(d_inv_sqrt[:, None] * A * d_inv_sqrt[None, :], jnp.float32)

    # --- deterministic parameters (shapes from Net.__init__) ---
    key = jax.random.PRNGKey(0)
    kx, k1, k2, k3, k4 = jax.random.split(key, 5)
    x = jax.random.normal(kx, (N, num_node_features), jnp.float32)

    w1 = _glorot(k1, (num_node_features, 64))
    b1 = jnp.zeros((1, 64), jnp.float32)
    w2 = _glorot(k2, (64, 128))
    b2 = jnp.zeros((1, 128), jnp.float32)
    p_topk = _glorot(k3, (1, 128))                              # TopKPooling projection
    w_fc = _glorot(k4, (128, num_classes))
    b_fc = jnp.zeros((1, num_classes), jnp.float32)
    params = (w1, b1, w2, b2, p_topk, w_fc, b_fc)

    out = net_forward(x, a_hat, batch_np, node_counts, params)
    out = jax.block_until_ready(out)

    assert out.shape == (B, num_classes)
    assert bool(jnp.all(jnp.isfinite(out)))
    print("KERNEL_OK")
</pallas_src>

<mosaic_0001>
module attributes {stable_mosaic.version = 11 : i64} {
  func.func @_net_fused_kernel(%arg0: memref<16x16xf32, #tpu.memory_space<vmem>>, %arg1: memref<16x8xf32, #tpu.memory_space<vmem>>, %arg2: memref<8x64xf32, #tpu.memory_space<vmem>>, %arg3: memref<1x64xf32, #tpu.memory_space<vmem>>, %arg4: memref<64x128xf32, #tpu.memory_space<vmem>>, %arg5: memref<1x128xf32, #tpu.memory_space<vmem>>, %arg6: memref<1x128xf32, #tpu.memory_space<vmem>>, %arg7: memref<16x16xf32, #tpu.memory_space<vmem>>, %arg8: memref<16x1xf32, #tpu.memory_space<vmem>>, %arg9: memref<2x16x1xf32, #tpu.memory_space<vmem>>, %arg10: memref<128x4xf32, #tpu.memory_space<vmem>>, %arg11: memref<1x4xf32, #tpu.memory_space<vmem>>, %arg12: memref<2x4xf32, #tpu.memory_space<vmem>>) attributes {dimension_semantics = [], scalar_prefetch = 0 : i64, scratch_operands = 0 : i64, tpu.core_type = #tpu.core_type<tc>} {
    %c0 = arith.constant 0 : index
    %c0_0 = arith.constant 0 : index
    %0 = vector.load %arg0[%c0, %c0_0] : memref<16x16xf32, #tpu.memory_space<vmem>>, vector<16x16xf32>
    %c0_1 = arith.constant 0 : index
    %c0_2 = arith.constant 0 : index
    %1 = vector.load %arg1[%c0_1, %c0_2] : memref<16x8xf32, #tpu.memory_space<vmem>>, vector<16x8xf32>
    %c0_3 = arith.constant 0 : index
    %c0_4 = arith.constant 0 : index
    %2 = vector.load %arg2[%c0_3, %c0_4] : memref<8x64xf32, #tpu.memory_space<vmem>>, vector<8x64xf32>
    %cst = arith.constant dense<0.000000e+00> : vector<16x64xf32>
    %3 = tpu.matmul %1, %2, %cst {dimension_numbers = #tpu.dot_dimension_numbers<[1], [0], [0], [1], [0, 0, 1, 1], [], []>} : vector<16x8xf32>, vector<8x64xf32>, vector<16x64xf32> -> vector<16x64xf32>
    %cst_5 = arith.constant dense<0.000000e+00> : vector<16x64xf32>
    %4 = tpu.matmul %0, %3, %cst_5 {dimension_numbers = #tpu.dot_dimension_numbers<[1], [0], [0], [1], [0, 0, 1, 1], [], []>} : vector<16x16xf32>, vector<16x64xf32>, vector<16x64xf32> -> vector<16x64xf32>
    %c0_6 = arith.constant 0 : index
    %c0_7 = arith.constant 0 : index
    %5 = vector.load %arg3[%c0_6, %c0_7] : memref<1x64xf32, #tpu.memory_space<vmem>>, vector<1x64xf32>
    %6 = vector.broadcast %5 : vector<1x64xf32> to vector<16x64xf32>
    %7 = arith.addf %4, %6 : vector<16x64xf32>
    %cst_8 = arith.constant 0.000000e+00 : f32
    %8 = vector.broadcast %cst_8 : f32 to vector<16x64xf32>
    %9 = arith.maximumf %7, %8 : vector<16x64xf32>
    %c0_9 = arith.constant 0 : index
    %c0_10 = arith.constant 0 : index
    %10 = vector.load %arg4[%c0_9, %c0_10] : memref<64x128xf32, #tpu.memory_space<vmem>>, vector<64x128xf32>
    %cst_11 = arith.constant dense<0.000000e+00> : vector<16x128xf32>
    %11 = tpu.matmul %9, %10, %cst_11 {dimension_numbers = #tpu.dot_dimension_numbers<[1], [0], [0], [1], [0, 0, 1, 1], [], []>} : vector<16x64xf32>, vector<64x128xf32>, vector<16x128xf32> -> vector<16x128xf32>
    %cst_12 = arith.constant dense<0.000000e+00> : vector<16x128xf32>
    %12 = tpu.matmul %0, %11, %cst_12 {dimension_numbers = #tpu.dot_dimension_numbers<[1], [0], [0], [1], [0, 0, 1, 1], [], []>} : vector<16x16xf32>, vector<16x128xf32>, vector<16x128xf32> -> vector<16x128xf32>
    %c0_13 = arith.constant 0 : index
    %c0_14 = arith.constant 0 : index
    %13 = vector.load %arg5[%c0_13, %c0_14] : memref<1x128xf32, #tpu.memory_space<vmem>>, vector<1x128xf32>
    %14 = vector.broadcast %13 : vector<1x128xf32> to vector<16x128xf32>
    %15 = arith.addf %12, %14 : vector<16x128xf32>
    %cst_15 = arith.constant 0.000000e+00 : f32
    %16 = vector.broadcast %cst_15 : f32 to vector<16x128xf32>
    %17 = arith.maximumf %15, %16 : vector<16x128xf32>
    %c0_16 = arith.constant 0 : index
    %c0_17 = arith.constant 0 : index
    %18 = vector.load %arg6[%c0_16, %c0_17] : memref<1x128xf32, #tpu.memory_space<vmem>>, vector<1x128xf32>
    %19 = arith.mulf %18, %18 : vector<1x128xf32>
    %cst_18 = arith.constant dense<0.000000e+00> : vector<1xf32>
    %20 = vector.multi_reduction <add>, %19, %cst_18 [1] : vector<1x128xf32> to vector<1xf32>
    %21 = vector.shape_cast %20 : vector<1xf32> to vector<1x1xf32>
    %22 = math.rsqrt %21 : vector<1x1xf32>
    %23 = vector.broadcast %18 : vector<1x128xf32> to vector<16x128xf32>
    %24 = arith.mulf %17, %23 : vector<16x128xf32>
    %cst_19 = arith.constant dense<0.000000e+00> : vector<16xf32>
    %25 = vector.multi_reduction <add>, %24, %cst_19 [1] : vector<16x128xf32> to vector<16xf32>
    %26 = vector.shape_cast %25 : vector<16xf32> to vector<16x1xf32>
    %27 = vector.broadcast %22 : vector<1x1xf32> to vector<16x1xf32>
    %28 = arith.mulf %26, %27 : vector<16x1xf32>
    %29 = math.tanh %28 : vector<16x1xf32>
    %30 = tpu.transpose %29, [1, 0] : vector<16x1xf32> -> vector<1x16xf32>
    %31 = tpu.iota {dimensions = array<i32: 0>} : vector<16x16xi32>
    %32 = tpu.iota {dimensions = array<i32: 1>} : vector<16x16xi32>
    %33 = vector.broadcast %30 : vector<1x16xf32> to vector<16x16xf32>
    %34 = vector.broadcast %29 : vector<16x1xf32> to vector<16x16xf32>
    %35 = arith.cmpf ogt, %33, %34 : vector<16x16xf32>
    %36 = vector.broadcast %30 : vector<1x16xf32> to vector<16x16xf32>
    %37 = vector.broadcast %29 : vector<16x1xf32> to vector<16x16xf32>
    %38 = arith.cmpf oeq, %36, %37 : vector<16x16xf32>
    %39 = arith.cmpi slt, %32, %31 : vector<16x16xi32>
    %40 = arith.andi %38, %39 : vector<16x16xi1>
    %41 = arith.ori %35, %40 : vector<16x16xi1>
    %c0_20 = arith.constant 0 : index
    %c0_21 = arith.constant 0 : index
    %42 = vector.load %arg7[%c0_20, %c0_21] : memref<16x16xf32, #tpu.memory_space<vmem>>, vector<16x16xf32>
    %cst_22 = arith.constant 5.000000e-01 : f32
    %43 = vector.broadcast %cst_22 : f32 to vector<16x16xf32>
    %44 = arith.cmpf ogt, %42, %43 : vector<16x16xf32>
    %45 = arith.andi %41, %44 : vector<16x16xi1>
    %46 = arith.extui %45 : vector<16x16xi1> to vector<16x16xi32>
    %47 = arith.sitofp %46 : vector<16x16xi32> to vector<16x16xf32>
    %cst_23 = arith.constant dense<0.000000e+00> : vector<16xf32>
    %48 = vector.multi_reduction <add>, %47, %cst_23 [1] : vector<16x16xf32> to vector<16xf32>
    %49 = vector.shape_cast %48 : vector<16xf32> to vector<16x1xf32>
    %c0_24 = arith.constant 0 : index
    %c0_25 = arith.constant 0 : index
    %50 = vector.load %arg8[%c0_24, %c0_25] : memref<16x1xf32, #tpu.memory_space<vmem>>, vector<16x1xf32>
    %51 = arith.cmpf olt, %49, %50 : vector<16x1xf32>
    %52 = vector.broadcast %29 : vector<16x1xf32> to vector<16x128xf32>
    %53 = arith.mulf %17, %52 : vector<16x128xf32>
    %c0_26 = arith.constant 0 : index
    %c0_27 = arith.constant 0 : index
    %c0_28 = arith.constant 0 : index
    %54 = vector.load %arg9[%c0_26, %c0_27, %c0_28] : memref<2x16x1xf32, #tpu.memory_space<vmem>>, vector<2x16x1xf32>
    %cst_29 = arith.constant 5.000000e-01 : f32
    %55 = vector.broadcast %cst_29 : f32 to vector<2x16x1xf32>
    %56 = arith.cmpf ogt, %54, %55 : vector<2x16x1xf32>
    %57 = vector.shape_cast %51 : vector<16x1xi1> to vector<1x16x1xi1>
    %58 = vector.broadcast %57 : vector<1x16x1xi1> to vector<2x16x1xi1>
    %59 = arith.andi %56, %58 : vector<2x16x1xi1>
    %60 = vector.shape_cast %53 : vector<16x128xf32> to vector<1x16x128xf32>
    %cst_30 = arith.constant -1.000000e+30 : f32
    %61 = vector.shape_cast %59 : vector<2x16x1xi1> to vector<2x16x1xi1>
    %62 = vector.broadcast %61 : vector<2x16x1xi1> to vector<2x16x128xi1>
    %63 = vector.shape_cast %60 : vector<1x16x128xf32> to vector<1x16x128xf32>
    %64 = vector.broadcast %63 : vector<1x16x128xf32> to vector<2x16x128xf32>
    %65 = vector.broadcast %cst_30 : f32 to vector<2x16x128xf32>
    %66 = arith.select %62, %64, %65 : vector<2x16x128xi1>, vector<2x16x128xf32>
    %cst_31 = arith.constant dense<0xFF800000> : vector<2x128xf32>
    %67 = vector.multi_reduction <maximumf>, %66, %cst_31 [1] : vector<2x16x128xf32> to vector<2x128xf32>
    %c0_32 = arith.constant 0 : index
    %c0_33 = arith.constant 0 : index
    %68 = vector.load %arg10[%c0_32, %c0_33] : memref<128x4xf32, #tpu.memory_space<vmem>>, vector<128x4xf32>
    %cst_34 = arith.constant dense<0.000000e+00> : vector<2x4xf32>
    %69 = tpu.matmul %67, %68, %cst_34 {dimension_numbers = #tpu.dot_dimension_numbers<[1], [0], [0], [1], [0, 0, 1, 1], [], []>} : vector<2x128xf32>, vector<128x4xf32>, vector<2x4xf32> -> vector<2x4xf32>
    %c0_35 = arith.constant 0 : index
    %c0_36 = arith.constant 0 : index
    %70 = vector.load %arg11[%c0_35, %c0_36] : memref<1x4xf32, #tpu.memory_space<vmem>>, vector<1x4xf32>
    %71 = vector.broadcast %70 : vector<1x4xf32> to vector<2x4xf32>
    %72 = arith.addf %69, %71 : vector<2x4xf32>
    %cst_37 = arith.constant dense<0xFF800000> : vector<2xf32>
    %73 = vector.multi_reduction <maximumf>, %72, %cst_37 [1] : vector<2x4xf32> to vector<2xf32>
    %74 = vector.shape_cast %73 : vector<2xf32> to vector<2x1xf32>
    %75 = vector.broadcast %74 : vector<2x1xf32> to vector<2x4xf32>
    %76 = arith.subf %72, %75 : vector<2x4xf32>
    %77 = math.exp %76 : vector<2x4xf32>
    %cst_38 = arith.constant dense<0.000000e+00> : vector<2xf32>
    %78 = vector.multi_reduction <add>, %77, %cst_38 [1] : vector<2x4xf32> to vector<2xf32>
    %79 = vector.shape_cast %78 : vector<2xf32> to vector<2x1xf32>
    %80 = math.log %79 : vector<2x1xf32>
    %81 = arith.addf %74, %80 : vector<2x1xf32>
    %82 = vector.broadcast %81 : vector<2x1xf32> to vector<2x4xf32>
    %83 = arith.subf %72, %82 : vector<2x4xf32>
    %c0_39 = arith.constant 0 : index
    %c0_40 = arith.constant 0 : index
    %84 = vector.load %arg12[%c0_39, %c0_40] : memref<2x4xf32, #tpu.memory_space<vmem>>, vector<2x4xf32>
    tpu.vector_store %arg12[%c0_39, %c0_40], %83 {strides = array<i32>} : memref<2x4xf32, #tpu.memory_space<vmem>>, vector<2x4xf32>,
    return
  }
}

</mosaic_0001>

<bundles_post_ra>
// kernel: tpu_custom_call.1
= control target key start
LH: loop header
LB: loop body
LE: loop exit
PB: predicated region body
PF: predicated region fallthrough
CT: control target
= control target key end

     0   :  { %vm47_vm0 = vcmask 64512   ;;  %s1139_s0 = inlined_call_operand.vmem [shape: f32[16,16], index: 0, kind: input, shape index: {}]   ;;  %s1140_s1 = inlined_call_operand.vmem [shape: f32[16,8], index: 1, kind: input, shape index: {}]   ;;  %s1141_s2 = inlined_call_operand.vmem [shape: f32[8,64], index: 2, kind: input, shape index: {}]   ;;  %s1142_s3 = inlined_call_operand.vmem [shape: f32[1,64], index: 3, kind: input, shape index: {}]   ;;  %s1143_s4 = inlined_call_operand.vmem [shape: f32[64,128], index: 4, kind: input, shape index: {}]   ;;  %s1144_s5 = inlined_call_operand.vmem [shape: f32[1,128], index: 5, kind: input, shape index: {}]   ;;  %s1145_s6 = inlined_call_operand.vmem [shape: f32[1,128], index: 6, kind: input, shape index: {}]   ;;  %s1146_s7 = inlined_call_operand.vmem [shape: f32[16,16], index: 7, kind: input, shape index: {}]   ;;  %s1147_s8 = inlined_call_operand.vmem [shape: f32[16,1], index: 8, kind: input, shape index: {}]   ;;  %s1148_s9 = inlined_call_operand.vmem [shape: f32[2,16,1], index: 9, kind: input, shape index: {}]   ;;  %s1149_s10 = inlined_call_operand.vmem [shape: f32[128,4], index: 10, kind: input, shape index: {}]   ;;  %s1150_s11 = inlined_call_operand.vmem [shape: f32[1,4], index: 11, kind: input, shape index: {}]   ;;  %s1151_s12 = inlined_call_operand.hbm [shape: f32[2,4], index: 12, kind: output, shape index: {}]  }
   0x1   :  { %v46_v0 = vld [vmem:[%s1141_s2] sm:$0xff]  ;;  %v45_v2 = vld [vmem:[%s1140_s1 + $0x8] sm:$0xff] }
   0x2   :  { %v44_v1 = vld [vmem:[%s1140_s1] sm:$0xff]  ;;  %726 = vmatprep.subr.mxu0 %v46_v0 }
   0x3   :  { %728 = vmatprep.mubr.msk.f32.mxu0 %vm47_vm0, %v44_v1 }
   0x4   :  { %17 = vsyncpa [#allocation3], 0  ;;  %727 = vmatpush3.msra.mxu0 %v46_v0  ;;  %v42_v3 = vld [vmem:[%s1139_s0] sm:$0xff]  ;;  %vm136_vm1 = vcmask 130048   ;;  %v221_v5 = vld [vmem:[%s1143_s4 + $0x8] sm:$0xff]  ;;  %vm228_vm2 = vcmask 523264   ;;  %v402_v33 = vlaneseq }
   0x5   :  { %729 = vmatmul.mubr.msk.f32.vlgmr.msra.gmra.mrb[0].mxu0 %vm47_vm0, %v45_v2  ;;  %v220_v4 = vld [vmem:[%s1143_s4] sm:$0xff]  ;;  %v222_v10 = vld [vmem:[%s1143_s4 + $0x10] sm:$0xff]  ;;  %v223_v11 = vld [vmem:[%s1143_s4 + $0x18] sm:$0xff]  ;;  %vm396_vm3 = vcmask 1040384   ;;  %v888_v61 = vmov 0.0   ;;  %v889_v2 = vmov 0  }
   0x6   :  { %735 = vmatprep.mubr.msk.f32.mxu0 %vm136_vm1, %v42_v3  ;;  %v803_v9 = vpack.c.bf16 %v221_v5, %v220_v4  ;;  %v43_v12 = vld [vmem:[%s1139_s0 + $0x8] sm:$0xff]  ;;  %v807_v13 = vpack.c.bf16 %v223_v11, %v222_v10  ;;  %v224_v14 = vld [vmem:[%s1143_s4 + $0x20] sm:$0xff]  ;;  %v226_v17 = vld [vmem:[%s1143_s4 + $0x30] sm:$0xff]  ;;  %v403_v34 = vshrl.u32 %v402_v33, 7  ;;  %v457_v55 = vand.u32 127, %v402_v33  ;;  %852 = vset.pattern.permute.xlu0 %v889_v2 }
   0x7   :  { %v225_v15 = vld [vmem:[%s1143_s4 + $0x28] sm:$0xff]  ;;  %v227_v18 = vld [vmem:[%s1143_s4 + $0x38] sm:$0xff]  ;;  %v677_v20 = vld [vmem:[%s1142_s3] ss:$0 sm:$0xff] }
   0x8   :  { %v811_v16 = vpack.c.bf16 %v225_v15, %v224_v14  ;;  %v815_v19 = vpack.c.bf16 %v227_v18, %v226_v17  ;;  %v394_v27 = vld [vmem:[%s1145_s6] sm:$0x1]  ;;  %v404_v35 = vsub.s32 0, %v403_v34  ;;  %v455_v58 = vadd.s32 8, %v403_v34  ;;  %v473_v60 = vld [vmem:[%s1146_s7 + $0x8] sm:$0xff]  ;;  %v550_v5 = vld [vmem:[%s1149_s10 + $0x10] sm:$0xff] }
   0x9   :  { %v395_v28 = vmul.f32 %v394_v27, %v394_v27  ;;  %v682_v36 = vld [vmem:[%s1144_s5] ss:$0 sm:$0xff]  ;;  %vm466_vm4 = vcmp.lt.s32.totalorder %v457_v55, %v403_v34  ;;  %vm475_vm14 = vcmp.gt.f32.partialorder %v473_v60, 0.5  ;;  %v549_v4 = vld [vmem:[%s1149_s10 + $0x8] sm:$0xff] }
   0xa   :  { %v405_v40 = vrot.slane %v394_v27, %v404_v35  ;;  %v472_v57 = vld [vmem:[%s1146_s7] sm:$0xff]  ;;  %vm467_vm10 = vcmp.lt.s32.totalorder %v457_v55, %v455_v58  ;;  %v495_v14 = vld [vmem:[%s1148_s9 + $0x8] sm:$0xff] }
   0xb   :  { %v397_v29 = vsel %vm396_vm3, %v395_v28, 0.0  ;;  %vm474_vm7 = vcmp.gt.f32.partialorder %v472_v57, 0.5  ;;  %v494_v10 = vld [vmem:[%s1148_s9] sm:$0xff]  ;;  %v489_v15 = vld [vmem:[%s1147_s8 + $0x8] sm:$0xff] }
   0xc   :  { %398 = vadd.xlane.f32.xlu0 %v397_v29  ;;  %v488_v11 = vld [vmem:[%s1147_s8] sm:$0xff]  ;;  %v557_v29 = vld [vmem:[%s1149_s10 + $0x48] sm:$0xff] }
   0xd   :  { %v556_v28 = vld [vmem:[%s1149_s10 + $0x40] sm:$0xff] }
   0xe   :  { %v560_v34 = vld [vmem:[%s1149_s10 + $0x60] sm:$0xff] }
  0x99   :  { %v399_v46 = vpop.xlane.xlu0 %398 }
  0x9a   :  { %854 = vrsqrt.f32 %v399_v46 }
  0xa4   :  { %v855_v47 = vpop.eup %854 }
  0xa5   :  { %v416_v48 = vrot.slane %v855_v47, %v404_v35 }
  0xd8   :  { %v730_v6 = vpop.f32.mrb[0].mxu0 }
  0xd9   :  { %v120_v7 = vpop.f32.mrb[1].mxu0 }
  0xda   :  { %v799_v8 = vpack.c.bf16 %v730_v6, %v120_v7  ;;  %v890_v6 = vmov 0.0|0.0  }
  0xdb   :  { %823 = vmatprep.subr.bf16.mxu1 %v890_v6 }
  0xdc   :  { %800 = vmatprep.subr.bf16.mxu0 %v799_v8 }
  0xdd   :  { %802 = vmatpush3.bf16.msra.mxu0 %v799_v8  ;;  %v551_v8 = vld [vmem:[%s1149_s10 + $0x18] sm:$0xff] }
  0xde   :  { %804 = vmatprep.subr.bf16.mxu0 %v803_v9 }
  0xe0   :  { %736 = vmatmul.mubr.msk.f32.vlgmr.msra.gmra.mrb[2].mxu0 %vm136_vm1, %v43_v12 }
  0xe1   :  { %806 = vmatpush3.bf16.msra.mxu0 %v803_v9  ;;  %v827_v9 = vpack.c.bf16 %v551_v8, %v550_v5 }
  0xe2   :  { %808 = vmatprep.subr.bf16.mxu0 %v807_v13 }
  0xe5   :  { %810 = vmatpush3.bf16.msra.mxu0 %v807_v13 }
  0xe6   :  { %812 = vmatprep.subr.bf16.mxu0 %v811_v16 }
  0xe9   :  { %814 = vmatpush3.bf16.msra.mxu0 %v811_v16  ;;  %v497_v16 = vld [vmem:[%s1148_s9 + $0x18] sm:$0xff] }
  0xea   :  { %816 = vmatprep.subr.bf16.mxu0 %v815_v19 }
  0xed   :  { %818 = vmatpush3.bf16.msra.mxu0 %v815_v19  ;;  %v552_v19 = vld [vmem:[%s1149_s10 + $0x20] sm:$0xff] }
 0x1b3   :  { %v737_v21 = vpop.f32.mrb[2].mxu0 }
 0x1b4   :  { %v215_v22 = vadd.f32 %v737_v21, %v677_v20  ;;  %v209_v23 = vpop.f32.mrb[3].mxu0 }
 0x1b5   :  { %v210_v24 = vadd.f32 %v677_v20, %v209_v23  ;;  %v553_v20 = vld [vmem:[%s1149_s10 + $0x28] sm:$0xff] }
 0x1b6   :  { %v219_v26 = vmax.f32 %v215_v22, 0.0  ;;  %v830_v21 = vpack.c.bf16 %v553_v20, %v552_v19 }
 0x1b7   :  { %v218_v25 = vmax.f32 %v210_v24, 0.0  ;;  %v554_v24 = vld [vmem:[%s1149_s10 + $0x30] sm:$0xff] }
 0x1b9   :  { %754 = vmatprep.mubr.msk.f32.mxu0 %vm228_vm2, %v218_v25  ;;  %v555_v25 = vld [vmem:[%s1149_s10 + $0x38] sm:$0xff] }
 0x1ba   :  { %755 = vmatmul.mubr.msk.f32.vlgmr.msra.gmra.mrb[4].mxu0 %vm228_vm2, %v219_v26  ;;  %v833_v27 = vpack.c.bf16 %v555_v25, %v554_v24 }
 0x1bb   :  { %761 = vmatprep.mubr.msk.f32.mxu0 %vm136_vm1, %v42_v3  ;;  %v548_v3 = vld [vmem:[%s1149_s10] sm:$0xff] }
 0x1bc   :  { %v824_v7 = vpack.c.bf16 %v549_v4, %v548_v3 }
 0x1be   :  { %825 = vmatpush3.bf16.msra.mxu1 %v824_v7 }
 0x1bf   :  { %826 = vmatprep.subr.bf16.mxu1 %v890_v6 }
 0x1c2   :  { %828 = vmatpush3.bf16.msra.mxu1 %v827_v9 }
 0x1c3   :  { %829 = vmatprep.subr.bf16.mxu1 %v890_v6 }
 0x1c6   :  { %831 = vmatpush3.bf16.msra.mxu1 %v830_v21 }
 0x1c7   :  { %832 = vmatprep.subr.bf16.mxu1 %v890_v6 }
 0x1ca   :  { %834 = vmatpush3.bf16.msra.mxu1 %v833_v27 }
 0x1cb   :  { %835 = vmatprep.subr.bf16.mxu1 %v890_v6 }
 0x28d   :  { %v756_v30 = vpop.f32.mrb[4].mxu0 }
 0x28e   :  { %v301_v31 = vpop.f32.mrb[5].mxu0 }
 0x28f   :  { %v819_v32 = vpack.c.bf16 %v756_v30, %v301_v31  ;;  %v836_v30 = vpack.c.bf16 %v557_v29, %v556_v28  ;;  %v558_v31 = vld [vmem:[%s1149_s10 + $0x50] sm:$0xff] }
 0x291   :  { %820 = vmatprep.subr.bf16.mxu0 %v819_v32  ;;  %837 = vmatpush3.bf16.msra.mxu1 %v836_v30 }
 0x292   :  { %822 = vmatpush3.bf16.msra.mxu0 %v819_v32  ;;  %838 = vmatprep.subr.bf16.mxu1 %v890_v6  ;;  %v559_v32 = vld [vmem:[%s1149_s10 + $0x58] sm:$0xff] }
 0x293   :  { %v839_v33 = vpack.c.bf16 %v559_v32, %v558_v31 }
 0x295   :  { %762 = vmatmul.mubr.msk.f32.vlgmr.msra.gmra.mrb[6].mxu0 %vm136_vm1, %v43_v12  ;;  %v496_v12 = vld [vmem:[%s1148_s9 + $0x10] sm:$0xff]  ;;  %840 = vmatpush3.bf16.msra.mxu1 %v839_v33 }
 0x296   :  { %vm500_vm3 = vcmp.gt.f32.partialorder %v496_v12, 0.5  ;;  %841 = vmatprep.subr.bf16.mxu1 %v890_v6 }
 0x368   :  { %v763_v37 = vpop.f32.mrb[6].mxu0 }
 0x369   :  { %v1010_v38 = vadd.f32 %v763_v37, %v682_v36  ;;  %v383_v39 = vpop.f32.mrb[7].mxu0 }
 0x36a   :  { %v1012_v41 = vadd.f32 %v682_v36, %v383_v39  ;;  %v562_v36 = vld [vmem:[%s1149_s10 + $0x70] sm:$0xff]  ;;  %v563_v39 = vld [vmem:[%s1149_s10 + $0x78] sm:$0xff] }
 0x36b   :  { %v393_v42 = vmax.f32 %v1010_v38, 0.0 }
 0x36c   :  { %v392_v43 = vmax.f32 %v1012_v41, 0.0 }
 0x36d   :  { %v408_v44 = vmul.f32 %v405_v40, %v393_v42 }
 0x36e   :  { %v407_v45 = vmul.f32 %v405_v40, %v392_v43  ;;  %v845_v40 = vpack.c.bf16 %v563_v39, %v562_v36 }
 0x36f   :  { %411 = vadd.xlane.f32.xlu1 %v408_v44 }
 0x370   :  { %409 = vadd.xlane.f32.xlu0 %v407_v45 }
 0x3fc   :  { %v412_v49 = vpop.xlane.xlu1 %411 }
 0x3fd   :  { %v410_v50 = vpop.xlane.xlu0 %409  ;;  %v418_v52 = vmul.f32 %v416_v48, %v412_v49 }
 0x3fe   :  { %v417_v51 = vmul.f32 %v416_v48, %v410_v50 }
 0x400   :  { %856 = vtanh.f32 %v417_v51 }
 0x401   :  { %858 = vtanh.f32 %v418_v52 }
 0x40a   :  { %v1020_v53 = vpop.eup %856 }
 0x40b   :  { %421 = vxpose.xlu1.b32.start [1/2] (short) (narrow) %v1020_v53, 8  ;;  %v1023_v54 = vpop.eup %858  ;;  %v492_v45 = vmul.f32 %v1020_v53, %v392_v43 }
 0x40c   :  { %v493_v46 = vmul.f32 %v1023_v54, %v393_v42 }
 0x40f   :  { %422 = vxpose.xlu1.b32.end [2/2] (short) (narrow) %v1023_v54, 8 }
 0x42d   :  { %853 = vset.pattern.permute.xlu1 %v889_v2 }
 0x48b   :  { %v437_v56 = vpop.trf.xlu1 }
 0x48c   :  { %v461_v59 = vrot.slane %v437_v56, %v404_v35  ;;  %v561_v35 = vld [vmem:[%s1149_s10 + $0x68] sm:$0xff] }
 0x48d   :  { %v842_v37 = vpack.c.bf16 %v561_v35, %v560_v34 }
 0x48e   :  { %vm462_vm5 = vcmp.gt.f32.partialorder %v461_v59, %v1020_v53  ;;  %vm464_vm6 = vcmp.eq.f32.partialorder %v461_v59, %v1020_v53  ;;  %vm465_vm9 = vcmp.eq.f32.partialorder %v461_v59, %v1023_v54  ;;  %vm463_vm12 = vcmp.gt.f32.partialorder %v461_v59, %v1023_v54 }
 0x48f   :  { %vm468_vm8 = vmand %vm464_vm6, %vm466_vm4  ;;  %vm499_vm6 = vcmp.gt.f32.partialorder %v495_v14, 0.5  ;;  %843 = vmatpush3.bf16.msra.mxu1 %v842_v37 }
 0x490   :  { %vm470_vm11 = vmor %vm462_vm5, %vm468_vm8  ;;  %vm501_vm8 = vcmp.gt.f32.partialorder %v497_v16, 0.5  ;;  %844 = vmatprep.subr.bf16.mxu1 %v890_v6 }
 0x491   :  { %vm476_vm13 = vmand %vm470_vm11, %vm474_vm7 }
 0x492   :  { %v685_v62 = vsel %vm476_vm13, 1.0, %v888_v61  ;;  %vm469_vm15 = vmand %vm465_vm9, %vm467_vm10 }
 0x493   :  { %v482_v63 = vsel %vm136_vm1, %v685_v62, 0.0  ;;  %vm471_vm0 = vmor %vm463_vm12, %vm469_vm15  ;;  %vm891_vm12 = vmmov 0   ;;  %846 = vmatpush3.bf16.msra.mxu1 %v845_v40 }
 0x494   :  { %483 = vadd.xlane.f32.xlu0 %v482_v63  ;;  %vm477_vm2 = vmand %vm471_vm0, %vm475_vm14  ;;  %796 = vmatprep.mubr.msk.f32.mxu1 %vm891_vm12, %v888_v61 }
 0x495   :  { %v686_v0 = vsel %vm477_vm2, 1.0, %v888_v61  ;;  %vm573_vm2 = vcmask 1041409  }
 0x496   :  { %v485_v1 = vsel %vm136_vm1, %v686_v0, 0.0  ;;  %vm498_vm1 = vcmp.gt.f32.partialorder %v494_v10, 0.5 }
 0x498   :  { %486 = vadd.xlane.f32.xlu0 %v485_v1  ;;  %v687_v1 = vld [vmem:[%s1150_s11] ss:$0 sm:$0xff]  ;;  %s892_s11 = smov [#allocation2]  }
 0x499   :  { %s667_s27 = sshll.u32 %s892_s11, 4  ;;  %s668_s27 = int_to_ptr.vmem [resolvable:$true] %s667_s27 }
 0x49a   :  { %s864_s28 = scalar_lea.vmem %s668_s27, 32  ;;  %p869_p1 = scmp.lt.s32.totalorder %s668_s27, %s668_s27 }
 0x49b   :  { %p865_p0 = scmp.ne.s32.totalorder %s668_s27, %s864_s28  ;;  %p870_p2 = scmp.lt.s32.totalorder %s864_s28, %s864_s28 }
 0x49d   :  { %p871_p3 = por %p870_p2, %p869_p1 }
 0x49f   :  { %p872_p4 = pnand %p871_p3, %p865_p0 }
 0x521   :  { %v484_v13 = vpop.xlane.xlu0 %483 }
 0x522   :  { %vm490_vm4 = vcmp.lt.f32.partialorder %v484_v13, %v488_v11 }
 0x523   :  { %vm506_vm5 = vmand %vm498_vm1, %vm490_vm4  ;;  %vm646_vm1 = vcmask 25600  }
 0x524   :  { %v510_v17 = vsel %vm506_vm5, 1, %v889_v2  ;;  %vm508_vm7 = vmand %vm500_vm3, %vm490_vm4 }
 0x525   :  { %515 = vperm.xlu0 %852, %v510_v17   ;;  %v487_v18 = vpop.xlane.xlu0 %486  ;;  %v512_v22 = vsel %vm508_vm7, 1, %v889_v2 }
 0x526   :  { %vm491_vm9 = vcmp.lt.f32.partialorder %v487_v18, %v489_v15 }
 0x527   :  { %vm507_vm10 = vmand %vm499_vm6, %vm491_vm9 }
 0x528   :  { %v511_v23 = vsel %vm507_vm10, 1, %v889_v2  ;;  %vm509_vm11 = vmand %vm501_vm8, %vm491_vm9 }
 0x529   :  { %521 = vperm.xlu0 %852, %v512_v22   ;;  %518 = vperm.xlu1 %853, %v511_v23   ;;  %v513_v26 = vsel %vm509_vm11, 1, %v889_v2 }
 0x52d   :  { %524 = vperm.xlu0 %852, %v513_v26  }
 0x5a4   :  { %v516_v44 = vpop.permute.xlu0 %515 }
 0x5a5   :  { %vm526_vm13 = vcmp.eq.s32.totalorder %v516_v44, 1 }
 0x5a6   :  { %v530_v49 = vsel %vm526_vm13, %v492_v45, -1e+30 }
 0x5a8   :  { %v519_v47 = vpop.permute.xlu1 %518  ;;  %v522_v48 = vpop.permute.xlu0 %521 }
 0x5a9   :  { %vm527_vm14 = vcmp.eq.s32.totalorder %v519_v47, 1  ;;  %vm528_vm15 = vcmp.eq.s32.totalorder %v522_v48, 1 }
 0x5aa   :  { %v531_v50 = vsel %vm527_vm14, %v493_v46, -1e+30  ;;  %v532_v56 = vsel %vm528_vm15, %v492_v45, -1e+30 }
 0x5ab   :  { %v534_v51 = vmax.f32 %v530_v49, %v531_v50 }
 0x5ac   :  { %v525_v52 = vpop.permute.xlu0 %524 }
 0x5ad   :  { %v535_v55 = vrot.slane %v534_v51, 4  ;;  %vm529_vm0 = vcmp.eq.s32.totalorder %v525_v52, 1 }
 0x5ae   :  { %v533_v57 = vsel %vm529_vm0, %v493_v46, -1e+30 }
 0x5af   :  { %v536_v58 = vmax.f32 %v534_v51, %v535_v55  ;;  %v541_v41 = vmax.f32 %v532_v56, %v533_v57 }
 0x5b1   :  { %v537_v59 = vrot.slane %v536_v58, 2  ;;  %v542_v43 = vrot.slane %v541_v41, 4 }
 0x5b3   :  { %v538_v53 = vmax.f32 %v536_v58, %v537_v59  ;;  %v543_v38 = vmax.f32 %v541_v41, %v542_v43 }
 0x5b5   :  { %v544_v60 = vrot.slane %v543_v38, 2  ;;  %v539_v54 = vrot.slane %v538_v53, 1 }
 0x5b7   :  { %v545_v42 = vmax.f32 %v543_v38, %v544_v60  ;;  %v540_v62 = vmax.f32 %v538_v53, %v539_v54 }
 0x5b9   :  { %v546_v61 = vrot.slane %v545_v42, 1 }
 0x5bb   :  { %v547_v63 = vmax.f32 %v545_v42, %v546_v61 }
 0x5bd   :  { %v574_v0 = vsel %vm573_vm2, %v547_v63, %v540_v62 }
 0x5be   :  { %797 = vmatmul.mubr.f32.vlgmr.msra.gmra.mrb[0].mxu1 %v574_v0 }
 0x691   :  { %v642_v2 = vpop.f32.mrb[0].mxu1 }
 0x692   :  { %v643_v3 = vadd.f32 %v687_v1, %v642_v2  ;;  %v798_v4 = vpop.f32.mrb[1].mxu1 }
 0x694   :  { %v647_v5 = vsel %vm646_vm1, %v643_v3, -inf }
 0x695   :  { %648 = vmax.xlane.f32.xlu0 %v647_v5 }
 0x722   :  { %v649_v6 = vpop.xlane.xlu0 %648 }
 0x723   :  { %v650_v7 = vsub.f32 %v643_v3, %v649_v6 }
 0x725   :  { %v651_v8 = vmul.f32 1.442695, %v650_v7 }
 0x727   :  { %860 = vpow2.f32 %v651_v8 }
 0x731   :  { %v861_v9 = vpop.eup %860 }
 0x732   :  { %v653_v10 = vsel %vm646_vm1, %v861_v9, 0.0 }
 0x733   :  { %654 = vadd.xlane.f32.xlu1 %v653_v10 }
 0x7c0   :  { %v655_v11 = vpop.xlane.xlu1 %654 }
 0x7c1   :  { %862 = vlog2.f32 %v655_v11 }
 0x7cb   :  { %v863_v12 = vpop.eup %862 }
 0x7cc   :  { %v657_v13 = vmul.f32 0.6931472, %v863_v12 }
 0x7ce   :  { %v658_v14 = vadd.f32 %v657_v13, %v649_v6 }
 0x7d0   :  { %v659_v15 = vsub.f32 %v643_v3, %v658_v14 }
 0x7d2   :  { %660 = vst.msk [vmem:[#allocation2] sm:$0x3] %vm646_vm1, %v659_v15 }
 0x7d3   :  { %875 = shalt.err (!%p872_p4)
}
 0x7d4   :  { %s876_s2 = scalar_lea.hbm %s1151_s12, 32 }
 0x7d5   :  { %p877_p5 = scmp.ne.s32.totalorder %s1151_s12, %s876_s2  ;;  %p880_p6 = scmp.lt.u32.totalorder %s876_s2, %s1151_s12 }
 0x7d7   :  { %p882_p7 = pnand %p880_p6, %p877_p5 }
 0x7d9   :  { %885 = shalt.err (!%p882_p7)
}
 0x7da   :  { %670 = dma.vmem_to_hbm [thread:$0]  %s668_s27, 32, %s1151_s12, [#allocation3]  }
 0x7db   :  { %886 = dma.done.wait [#allocation3], 32  }
 0x7dc   :  { %887 = vsyncadd [#allocation3], 4294967264 }
 0x7dd   :  { %674 = vsyncpa [#allocation3], 1 }

</bundles_post_ra>
